<compile_context>
chip_gen: v7x
topology: tpu7x:2x2x1
jax: 0.10.0
libtpu: 0.0.40
codegen_flags: <defaults>
</compile_context>

<pallas_src>
import functools

import jax
import jax.numpy as jnp
from jax.experimental import pallas as pl
from jax.experimental.pallas import tpu as pltpu


def _round_up(n, m):
    return ((n + m - 1) // m) * m


def encoder_kernel(x_ref, w1_ref, b1_ref, w2_ref, b2_ref, w3_ref, b3_ref,
                   w4_ref, b4_ref, out_ref, *, z_dim):
    bf16 = jnp.bfloat16

    # Layer 1: Linear + ReLU  (bf16 MXU inputs, f32 accumulate, bf16 ReLU)
    x = x_ref[...].astype(bf16)
    h = jnp.dot(x, w1_ref[...], preferred_element_type=jnp.float32) + b1_ref[...]
    h = jnp.maximum(h.astype(bf16), 0)

    # Layer 2: Linear + ReLU
    h = jnp.dot(h, w2_ref[...], preferred_element_type=jnp.float32) + b2_ref[...]
    h = jnp.maximum(h.astype(bf16), 0)

    # Layer 3: Linear + ReLU
    h = jnp.dot(h, w3_ref[...], preferred_element_type=jnp.float32) + b3_ref[...]
    h = jnp.maximum(h.astype(bf16), 0)

    # Layer 4: fused (TB, 2*z_dim) output. Columns >= z_dim get the stddev
    # transform 1e-6 + softplus(.) (numerically stable form); columns < z_dim
    # (the mean half) pass through unchanged.
    o = jnp.dot(h, w4_ref[...], preferred_element_type=jnp.float32) + b4_ref[...]
    sp = 1e-6 + jnp.maximum(o, 0.0) + jnp.log1p(jnp.exp(-jnp.abs(o)))
    col = jax.lax.broadcasted_iota(jnp.int32, o.shape, 1)
    out_ref[...] = jnp.where(col >= z_dim, sp, o)


def encoder_forward(x, params, z_dim, block_b=None):
    """x: [B, num_input] f32. Returns (mean [B, z_dim], stddev [B, z_dim]) f32."""
    B, num_input = x.shape
    w1, b1, w2, b2, w3, b3, w4, b4 = params
    n_hidden = w1.shape[1]
    n_mid = w3.shape[1]
    out_dim = w4.shape[1]          # 2 * z_dim

    # Batch tile selection:
    #   * B <= 256: one block equal to the full batch (no (8,)-divisibility
    #     requirement when the block equals the array dim; no padding needed).
    #   * large B: big tiles (amortize MXU weight push + per-step overhead) but
    #     keep >= 2 grid steps so v7x's two TensorCores both get work.
    if block_b is None:
        TB = B if B <= 256 else min(1024, _round_up(pl.cdiv(B, 2), 256))
    else:
        TB = B if block_b >= B else _round_up(block_b, 8)
    nb = pl.cdiv(B, TB)            # last block may be partial; no jnp.pad copy

    const = lambda i: (0, 0)       # weights / biases: same block every step (VMEM-resident)
    batched = lambda i: (i, 0)     # x / output: tiled along batch

    in_specs = [
        pl.BlockSpec((TB, num_input), batched),          # x
        pl.BlockSpec((num_input, n_hidden), const),      # w1 (bf16)
        pl.BlockSpec((1, n_hidden), const),              # b1
        pl.BlockSpec((n_hidden, n_hidden), const),       # w2 (bf16)
        pl.BlockSpec((1, n_hidden), const),              # b2
        pl.BlockSpec((n_hidden, n_mid), const),          # w3 (bf16)
        pl.BlockSpec((1, n_mid), const),                 # b3
        pl.BlockSpec((n_mid, out_dim), const),           # w4 (bf16)
        pl.BlockSpec((1, out_dim), const),               # b4
    ]
    out_specs = pl.BlockSpec((TB, out_dim), batched)     # fused [mean | std]

    flops = 2 * B * (num_input * n_hidden + n_hidden * n_hidden
                     + n_hidden * n_mid + n_mid * out_dim)
    weight_bytes = sum(int(a.size) * a.dtype.itemsize
                       for a in (w1, b1, w2, b2, w3, b3, w4, b4))
    cost = pl.CostEstimate(
        flops=flops,
        transcendentals=2 * B * out_dim,                 # exp + log1p on the output slab
        bytes_accessed=int(x.size) * 4 + B * out_dim * 4 + weight_bytes,
    )

    out = pl.pallas_call(
        functools.partial(encoder_kernel, z_dim=z_dim),
        out_shape=jax.ShapeDtypeStruct((B, out_dim), jnp.float32),
        grid=(nb,),
        in_specs=in_specs,
        out_specs=out_specs,
        compiler_params=pltpu.CompilerParams(
            dimension_semantics=("parallel",),           # shard batch grid across v7x TCs
            vmem_limit_bytes=32 * 1024 * 1024),          # covers TB=1024 on v5e's 16 MiB default
        cost_estimate=cost,
    )(x, w1, b1, w2, b2, w3, b3, w4, b4)

    mean = out[:, :z_dim]
    stddev = out[:, z_dim:]
    return mean, stddev


def init_params(key, num_input, n_hidden=512, z_dim=32):
    """torch.nn.Linear-style init (U[-1/sqrt(fan_in), 1/sqrt(fan_in)]).

    Weights are [in_features, out_features] and cast to bf16 (MXU input dtype);
    biases are [1, out_features] and kept f32. Layer 4 produces 2*z_dim outputs
    (mean | std halves), matching the PyTorch module layout.
    """
    dims = [(num_input, n_hidden), (n_hidden, n_hidden),
            (n_hidden, 128), (128, 2 * z_dim)]
    params = []
    for (fan_in, fan_out) in dims:
        key, kw, kb = jax.random.split(key, 3)
        bound = 1.0 / jnp.sqrt(jnp.float32(fan_in))
        w = jax.random.uniform(kw, (fan_in, fan_out), jnp.float32, -bound, bound)
        b = jax.random.uniform(kb, (1, fan_out), jnp.float32, -bound, bound)
        params += [w.astype(jnp.bfloat16), b]
    return tuple(params)


def encoder_reference(x, params, z_dim):
    """Pure-JAX reference mirroring the kernel's bf16-input / f32-accumulate math."""
    w1, b1, w2, b2, w3, b3, w4, b4 = params
    bf16 = jnp.bfloat16

    def lin(h, w, b):
        return jnp.dot(h.astype(bf16), w, preferred_element_type=jnp.float32) + b

    h = jax.nn.relu(lin(x, w1, b1))
    h = jax.nn.relu(lin(h, w2, b2))
    h = jax.nn.relu(lin(h, w3, b3))
    o = lin(h, w4, b4)
    mean = o[:, :z_dim]
    stddev = 1e-6 + jax.nn.softplus(o[:, z_dim:])
    return mean, stddev


if __name__ == "__main__":
    # TODO(synk): keep_prob / dropout is declared but unused in the PyTorch forward, so it is omitted.
    B = 12            # not a multiple of the block size -> exercises partial-block handling
    num_input = 64
    z_dim = 32

    key = jax.random.PRNGKey(0)
    key, kx = jax.random.split(key)
    x = jax.random.normal(kx, (B, num_input), jnp.float32)

    params = init_params(key, num_input, n_hidden=512, z_dim=z_dim)
    mean_ref, std_ref = encoder_reference(x, params, z_dim)

    # 1) Explicit small tile -> 2-step batch grid with a partial (unpadded) last block.
    mean, stddev = encoder_forward(x, params, z_dim, block_b=8)
    mean = jax.block_until_ready(mean)
    stddev = jax.block_until_ready(stddev)
    assert mean.shape == (B, z_dim) and stddev.shape == (B, z_dim)
    assert jnp.allclose(mean, mean_ref, atol=2e-3, rtol=2e-3)
    assert jnp.allclose(stddev, std_ref, atol=2e-3, rtol=2e-3)
    assert bool(jnp.all(stddev > 0.0))

    # 2) Default tile selection (single full-batch block here).
    mean2, stddev2 = encoder_forward(x, params, z_dim)
    mean2 = jax.block_until_ready(mean2)
    stddev2 = jax.block_until_ready(stddev2)
    assert jnp.allclose(mean2, mean_ref, atol=2e-3, rtol=2e-3)
    assert jnp.allclose(stddev2, std_ref, atol=2e-3, rtol=2e-3)

    print("KERNEL_OK")
</pallas_src>

<mosaic_0001>
module attributes {stable_mosaic.version = 11 : i64} {
  func.func @encoder_kernel(%arg0: i32, %arg1: memref<8x64xf32, #tpu.memory_space<vmem>>, %arg2: memref<64x512xbf16, #tpu.memory_space<vmem>>, %arg3: memref<1x512xf32, #tpu.memory_space<vmem>>, %arg4: memref<512x512xbf16, #tpu.memory_space<vmem>>, %arg5: memref<1x512xf32, #tpu.memory_space<vmem>>, %arg6: memref<512x128xbf16, #tpu.memory_space<vmem>>, %arg7: memref<1x128xf32, #tpu.memory_space<vmem>>, %arg8: memref<128x64xbf16, #tpu.memory_space<vmem>>, %arg9: memref<1x64xf32, #tpu.memory_space<vmem>>, %arg10: memref<8x64xf32, #tpu.memory_space<vmem>>) attributes {dimension_semantics = [#tpu.dimension_semantics<parallel>], iteration_bounds = array<i64: 2>, scalar_prefetch = 0 : i64, scratch_operands = 0 : i64, tpu.core_type = #tpu.core_type<tc>, window_params = [{transform_indices = @transform_0, window_bounds = array<i64: 8, 64>}, {pipeline_mode = #tpu.pipeline_mode<synchronous>, transform_indices = @transform_1, window_bounds = array<i64: 64, 512>}, {pipeline_mode = #tpu.pipeline_mode<synchronous>, transform_indices = @transform_2, window_bounds = array<i64: 1, 512>}, {pipeline_mode = #tpu.pipeline_mode<synchronous>, transform_indices = @transform_3, window_bounds = array<i64: 512, 512>}, {pipeline_mode = #tpu.pipeline_mode<synchronous>, transform_indices = @transform_4, window_bounds = array<i64: 1, 512>}, {pipeline_mode = #tpu.pipeline_mode<synchronous>, transform_indices = @transform_5, window_bounds = array<i64: 512, 128>}, {pipeline_mode = #tpu.pipeline_mode<synchronous>, transform_indices = @transform_6, window_bounds = array<i64: 1, 128>}, {pipeline_mode = #tpu.pipeline_mode<synchronous>, transform_indices = @transform_7, window_bounds = array<i64: 128, 64>}, {pipeline_mode = #tpu.pipeline_mode<synchronous>, transform_indices = @transform_8, window_bounds = array<i64: 1, 64>}, {transform_indices = @transform_9, window_bounds = array<i64: 8, 64>}]} {
    %c0 = arith.constant 0 : index
    %c0_0 = arith.constant 0 : index
    %0 = vector.load %arg1[%c0, %c0_0] : memref<8x64xf32, #tpu.memory_space<vmem>>, vector<8x64xf32>
    %1 = arith.truncf %0 : vector<8x64xf32> to vector<8x64xbf16>
    %c0_1 = arith.constant 0 : index
    %c0_2 = arith.constant 0 : index
    %2 = vector.load %arg2[%c0_1, %c0_2] : memref<64x512xbf16, #tpu.memory_space<vmem>>, vector<64x512xbf16>
    %cst = arith.constant dense<0.000000e+00> : vector<8x512xf32>
    %3 = tpu.matmul %1, %2, %cst {dimension_numbers = #tpu.dot_dimension_numbers<[1], [0], [0], [1], [0, 0, 1, 1], [], []>} : vector<8x64xbf16>, vector<64x512xbf16>, vector<8x512xf32> -> vector<8x512xf32>
    %c0_3 = arith.constant 0 : index
    %c0_4 = arith.constant 0 : index
    %4 = vector.load %arg3[%c0_3, %c0_4] : memref<1x512xf32, #tpu.memory_space<vmem>>, vector<1x512xf32>
    %5 = vector.broadcast %4 : vector<1x512xf32> to vector<8x512xf32>
    %6 = arith.addf %3, %5 : vector<8x512xf32>
    %7 = arith.truncf %6 : vector<8x512xf32> to vector<8x512xbf16>
    %cst_5 = arith.constant 0.000000e+00 : bf16
    %8 = vector.broadcast %cst_5 : bf16 to vector<8x512xbf16>
    %9 = arith.maximumf %7, %8 : vector<8x512xbf16>
    %c0_6 = arith.constant 0 : index
    %c0_7 = arith.constant 0 : index
    %10 = vector.load %arg4[%c0_6, %c0_7] : memref<512x512xbf16, #tpu.memory_space<vmem>>, vector<512x512xbf16>
    %cst_8 = arith.constant dense<0.000000e+00> : vector<8x512xf32>
    %11 = tpu.matmul %9, %10, %cst_8 {dimension_numbers = #tpu.dot_dimension_numbers<[1], [0], [0], [1], [0, 0, 1, 1], [], []>} : vector<8x512xbf16>, vector<512x512xbf16>, vector<8x512xf32> -> vector<8x512xf32>
    %c0_9 = arith.constant 0 : index
    %c0_10 = arith.constant 0 : index
    %12 = vector.load %arg5[%c0_9, %c0_10] : memref<1x512xf32, #tpu.memory_space<vmem>>, vector<1x512xf32>
    %13 = vector.broadcast %12 : vector<1x512xf32> to vector<8x512xf32>
    %14 = arith.addf %11, %13 : vector<8x512xf32>
    %15 = arith.truncf %14 : vector<8x512xf32> to vector<8x512xbf16>
    %cst_11 = arith.constant 0.000000e+00 : bf16
    %16 = vector.broadcast %cst_11 : bf16 to vector<8x512xbf16>
    %17 = arith.maximumf %15, %16 : vector<8x512xbf16>
    %c0_12 = arith.constant 0 : index
    %c0_13 = arith.constant 0 : index
    %18 = vector.load %arg6[%c0_12, %c0_13] : memref<512x128xbf16, #tpu.memory_space<vmem>>, vector<512x128xbf16>
    %cst_14 = arith.constant dense<0.000000e+00> : vector<8x128xf32>
    %19 = tpu.matmul %17, %18, %cst_14 {dimension_numbers = #tpu.dot_dimension_numbers<[1], [0], [0], [1], [0, 0, 1, 1], [], []>} : vector<8x512xbf16>, vector<512x128xbf16>, vector<8x128xf32> -> vector<8x128xf32>
    %c0_15 = arith.constant 0 : index
    %c0_16 = arith.constant 0 : index
    %20 = vector.load %arg7[%c0_15, %c0_16] : memref<1x128xf32, #tpu.memory_space<vmem>>, vector<1x128xf32>
    %21 = vector.broadcast %20 : vector<1x128xf32> to vector<8x128xf32>
    %22 = arith.addf %19, %21 : vector<8x128xf32>
    %23 = arith.truncf %22 : vector<8x128xf32> to vector<8x128xbf16>
    %cst_17 = arith.constant 0.000000e+00 : bf16
    %24 = vector.broadcast %cst_17 : bf16 to vector<8x128xbf16>
    %25 = arith.maximumf %23, %24 : vector<8x128xbf16>
    %c0_18 = arith.constant 0 : index
    %c0_19 = arith.constant 0 : index
    %26 = vector.load %arg8[%c0_18, %c0_19] : memref<128x64xbf16, #tpu.memory_space<vmem>>, vector<128x64xbf16>
    %cst_20 = arith.constant dense<0.000000e+00> : vector<8x64xf32>
    %27 = tpu.matmul %25, %26, %cst_20 {dimension_numbers = #tpu.dot_dimension_numbers<[1], [0], [0], [1], [0, 0, 1, 1], [], []>} : vector<8x128xbf16>, vector<128x64xbf16>, vector<8x64xf32> -> vector<8x64xf32>
    %c0_21 = arith.constant 0 : index
    %c0_22 = arith.constant 0 : index
    %28 = vector.load %arg9[%c0_21, %c0_22] : memref<1x64xf32, #tpu.memory_space<vmem>>, vector<1x64xf32>
    %29 = vector.broadcast %28 : vector<1x64xf32> to vector<8x64xf32>
    %30 = arith.addf %27, %29 : vector<8x64xf32>
    %cst_23 = arith.constant 0.000000e+00 : f32
    %31 = vector.broadcast %cst_23 : f32 to vector<8x64xf32>
    %32 = arith.maximumf %30, %31 : vector<8x64xf32>
    %cst_24 = arith.constant 9.99999997E-7 : f32
    %33 = vector.broadcast %cst_24 : f32 to vector<8x64xf32>
    %34 = arith.addf %33, %32 : vector<8x64xf32>
    %35 = math.absf %30 : vector<8x64xf32>
    %cst_25 = arith.constant 0.000000e+00 : f32
    %36 = vector.broadcast %cst_25 : f32 to vector<8x64xf32>
    %37 = arith.subf %36, %35 : vector<8x64xf32>
    %38 = math.exp %37 : vector<8x64xf32>
    %39 = math.log1p %38 : vector<8x64xf32>
    %40 = arith.addf %34, %39 : vector<8x64xf32>
    %41 = tpu.iota {dimensions = array<i32: 1>} : vector<8x64xi32>
    %c32_i32 = arith.constant 32 : i32
    %42 = vector.broadcast %c32_i32 : i32 to vector<8x64xi32>
    %43 = arith.cmpi sge, %41, %42 : vector<8x64xi32>
    %44 = arith.select %43, %40, %30 : vector<8x64xi1>, vector<8x64xf32>
    %c0_26 = arith.constant 0 : index
    %c0_27 = arith.constant 0 : index
    %45 = vector.load %arg10[%c0_26, %c0_27] : memref<8x64xf32, #tpu.memory_space<vmem>>, vector<8x64xf32>
    tpu.vector_store %arg10[%c0_26, %c0_27], %44 {strides = array<i32>} : memref<8x64xf32, #tpu.memory_space<vmem>>, vector<8x64xf32>,
    return
  }
  func.func @transform_0(%arg0: i32) -> (i32, i32) {
    %c0_i32 = arith.constant 0 : i32
    %c0_i32_0 = arith.constant 0 : i32
    return %arg0, %c0_i32 : i32, i32
  }
  func.func @transform_1(%arg0: i32) -> (i32, i32) {
    %c0_i32 = arith.constant 0 : i32
    %c0_i32_0 = arith.constant 0 : i32
    %c0_i32_1 = arith.constant 0 : i32
    return %c0_i32, %c0_i32_0 : i32, i32
  }
  func.func @transform_2(%arg0: i32) -> (i32, i32) {
    %c0_i32 = arith.constant 0 : i32
    %c0_i32_0 = arith.constant 0 : i32
    %c0_i32_1 = arith.constant 0 : i32
    return %c0_i32, %c0_i32_0 : i32, i32
  }
  func.func @transform_3(%arg0: i32) -> (i32, i32) {
    %c0_i32 = arith.constant 0 : i32
    %c0_i32_0 = arith.constant 0 : i32
    %c0_i32_1 = arith.constant 0 : i32
    return %c0_i32, %c0_i32_0 : i32, i32
  }
  func.func @transform_4(%arg0: i32) -> (i32, i32) {
    %c0_i32 = arith.constant 0 : i32
    %c0_i32_0 = arith.constant 0 : i32
    %c0_i32_1 = arith.constant 0 : i32
    return %c0_i32, %c0_i32_0 : i32, i32
  }
  func.func @transform_5(%arg0: i32) -> (i32, i32) {
    %c0_i32 = arith.constant 0 : i32
    %c0_i32_0 = arith.constant 0 : i32
    %c0_i32_1 = arith.constant 0 : i32
    return %c0_i32, %c0_i32_0 : i32, i32
  }
  func.func @transform_6(%arg0: i32) -> (i32, i32) {
    %c0_i32 = arith.constant 0 : i32
    %c0_i32_0 = arith.constant 0 : i32
    %c0_i32_1 = arith.constant 0 : i32
    return %c0_i32, %c0_i32_0 : i32, i32
  }
  func.func @transform_7(%arg0: i32) -> (i32, i32) {
    %c0_i32 = arith.constant 0 : i32
    %c0_i32_0 = arith.constant 0 : i32
    %c0_i32_1 = arith.constant 0 : i32
    return %c0_i32, %c0_i32_0 : i32, i32
  }
  func.func @transform_8(%arg0: i32) -> (i32, i32) {
    %c0_i32 = arith.constant 0 : i32
    %c0_i32_0 = arith.constant 0 : i32
    %c0_i32_1 = arith.constant 0 : i32
    return %c0_i32, %c0_i32_0 : i32, i32
  }
  func.func @transform_9(%arg0: i32) -> (i32, i32) {
    %c0_i32 = arith.constant 0 : i32
    %c0_i32_0 = arith.constant 0 : i32
    return %arg0, %c0_i32 : i32, i32
  }
}

</mosaic_0001>

<bundles_post_ra>
// kernel: tpu_custom_call.1
= control target key start
LH: loop header
LB: loop body
LE: loop exit
PB: predicated region body
PF: predicated region fallthrough
CT: control target
= control target key end

     0   :  { %14 = vsyncpa [#allocation3], 0  ;;  %s3256_s0 = inlined_call_operand.vmem [shape: f32[12,64], index: 0, kind: input, shape index: {}]   ;;  %s3257_s1 = inlined_call_operand.hbm [shape: bf16[64,512], index: 1, kind: input, shape index: {}]   ;;  %s3258_s2 = inlined_call_operand.vmem [shape: f32[1,512], index: 2, kind: input, shape index: {}]   ;;  %s3259_s3 = inlined_call_operand.hbm [shape: bf16[512,512], index: 3, kind: input, shape index: {}]   ;;  %s3260_s4 = inlined_call_operand.vmem [shape: f32[1,512], index: 4, kind: input, shape index: {}]   ;;  %s3261_s5 = inlined_call_operand.hbm [shape: bf16[512,128], index: 5, kind: input, shape index: {}]   ;;  %s3262_s6 = inlined_call_operand.vmem [shape: f32[1,128], index: 6, kind: input, shape index: {}]   ;;  %s3263_s7 = inlined_call_operand.vmem [shape: bf16[128,64], index: 7, kind: input, shape index: {}]   ;;  %s3264_s8 = inlined_call_operand.vmem [shape: f32[1,64], index: 8, kind: input, shape index: {}]   ;;  %s3265_s9 = inlined_call_operand.hbm [shape: f32[12,64], index: 9, kind: output, shape index: {}]  }
   0x1   :  { %15 = vsyncpa [#allocation6], 0 }
   0x2   :  { %16 = vsyncpa [#allocation4], 0 }
   0x3   :  { %18 = vsyncpa [#allocation4 + $0x1], 0  ;;  %s2973_s30 = smov 0   ;;  %s2975_s10 = smov 0  }
   0x4   :  { %s2977_s11 = smov 0   ;;  %s2979_s12 = smov 0  }
   0x5 LB: > { %3274 = sst [smem:[#allocation12_spill]] %s2898_s30  ;;  %s2994_s13 = sadd.s32 4294967295, %s2910_s12   ;;  %s2910_s12 = sphi %s2979_s12, %s3293_s12   ;;  %s2906_s11 = sphi %s2977_s11, %s3295_s11   ;;  %s2902_s10 = sphi %s2975_s10, %s3297_s10   ;;  %s2898_s30 = sphi %s2973_s30, %s3296_s30  }
   0x6   : > { %3275 = sst [smem:[#allocation13_spill]] %s2906_s11  ;;  %s2130_s14 = sadd.s32 4294967294, %s2910_s12  }
   0x7   : > { %s2998_s15 = sadd.s32 1, %s2910_s12   ;;  %s225_s16 = sadd.s32 1, %s2906_s11 }
   0x8   : > { %3276 = sst [smem:[#allocation14_spill]] %s2998_s15  ;;  %s222_s17 = ssub.s32 %s2910_s12, %s2998_s15 }
   0x9   : > { %p235_p0 = scmp.ne.s32.totalorder %s2906_s11, %s2902_s10  ;;  %p223_p1 = scmp.eq.s32.totalorder %s222_s17, 0 }
   0xa   : > { %p236_p2 = scmp.eq.s32.totalorder %s2994_s13, 1  ;;  %p241_p3 = scmp.ne.s32.totalorder %s2902_s10, %s2898_s30 }
   0xb   : > { %p242_p4 = scmp.eq.s32.totalorder %s2130_s14, 1  ;;  %p2131_p7 = scmp.ge.s32.totalorder %s2910_s12, 1 }
   0xc   : > { %s3009_s18 = scalar_select %p223_p1, %s2906_s11, %s225_s16  }
   0xd   : > { %p3011_p5 = por %p236_p2, %p235_p0  ;;  %p3015_p6 = por %p242_p4, %p241_p3 }
   0xe   : > { %3277 = sst [smem:[#allocation15_spill]] %s3009_s18  ;;  %p249_p8 = scmp.lt.s32.totalorder %s2910_s12, 3 }
   0xf   : > { %s3278_s19 = scalar_select %p3011_p5, 1, 0 }
  0x10   : > { %s3279_s20 = scalar_select %p3015_p6, 1, 0 }
  0x11   : > { %p3266_p9 = scmp.eq.s32.totalorder %s2994_s13, 0  ;;  %p3022_p10 = pnand %p2131_p7, %p249_p8 }
  0x12   : > { %3280 = sst [smem:[#allocation16_spill]] %s3279_s20  ;;  %s2912_s22 = smov [#allocation5]  }
  0x13   : > { %s3281_s21 = scalar_select %p3022_p10, 1, 0 }
  0x14   : > { %p2433_p11 = pneg %p3022_p10  ;;  %s277_s23 = sshll.u32 %s2912_s22, 4  ;;  %s3028_s23 = int_to_ptr.vmem [resolvable:$true] %s277_s23 }
  0x15   : > { %s2913_s25 = smov [#allocation2]   ;;  %s2914_s27 = smov [#allocation7]  }
  0x16   : > { %p3032_p12 = pnand %p3266_p9, %p2433_p11  ;;  %s261_s26 = sshll.u32 %s2913_s25, 4  ;;  %s3036_s26 = int_to_ptr.vmem [resolvable:$true] %s261_s26 }
  0x17   : > { %s3038_s28 = sshll.u32 %s2914_s27, 4  ;;  %s2756_s16 = scalar_lea.hbm %s3259_s3, 16384  ;;  %s294_s28 = int_to_ptr.vmem [resolvable:$true] %s3038_s28 }
  0x18   : > { %p2757_p13 = scmp.ne.s32.totalorder %s3259_s3, %s2756_s16  ;;  %p3048_p0 = pneg %p3032_p12 }
  0x19   : > { %p2763_p3 = scmp.lt.u32.totalorder %s2756_s16, %s3259_s3 }
  0x1a   : > { %p2759_p1 = pnand %p3048_p0, %p2757_p13 }
  0x1c   : > { %p2760_p2 = pneg %p2759_p1 }
  0x1e   : > { %p2765_p4 = pnand %p2763_p3, %p2760_p2 }
  0x20   : > { %2768 = shalt.err (!%p2765_p4)
}
  0x21   : > { %s2769_s29 = scalar_lea.vmem %s3028_s23, 16384  ;;  %p2777_p9 = scmp.lt.s32.totalorder %s3028_s23, %s3028_s23 }
  0x22   : > { %p2770_p7 = scmp.ne.s32.totalorder %s3028_s23, %s2769_s29  ;;  %p2778_p6 = scmp.lt.s32.totalorder %s2769_s29, %s2769_s29 }
  0x24   : > { %p2772_p8 = pnand %p2770_p7, %p3048_p0  ;;  %p2779_p13 = por %p2778_p6, %p2777_p9 }
  0x26   : > { %p2773_p11 = pneg %p2772_p8 }
  0x28   : > { %p2780_p1 = pnand %p2779_p13, %p2773_p11 }
  0x2a   : > { %2783 = shalt.err (!%p2780_p1)
}
  0x2b   : > { %s2915_s14 = smov 256   ;;  %s2916_s16 = smov 16  }
  0x2c   : > { %2439 = dma.hbm_to_vmem [thread:$0]  (!%p3032_p12), %s3259_s3, 16384, %s3028_s23, [#allocation6], %s2915_s14, %s2915_s14, %s2916_s16  }
  0x2d   : > { %s2784_s11 = scalar_lea.hbm %s3257_s1, 2048 }
  0x2e   : > { %p2785_p6 = scmp.ne.s32.totalorder %s3257_s1, %s2784_s11  ;;  %p2791_p3 = scmp.lt.u32.totalorder %s2784_s11, %s3257_s1 }
  0x30   : > { %p2787_p9 = pnand %p2785_p6, %p3048_p0 }
  0x32   : > { %p2788_p2 = pneg %p2787_p9 }
  0x34   : > { %p2793_p4 = pnand %p2791_p3, %p2788_p2 }
  0x36   : > { %2796 = shalt.err (!%p2793_p4)
}
  0x37   : > { %s2797_s23 = scalar_lea.vmem %s3036_s26, 2048  ;;  %p2805_p13 = scmp.lt.s32.totalorder %s3036_s26, %s3036_s26 }
  0x38   : > { %p2798_p7 = scmp.ne.s32.totalorder %s3036_s26, %s2797_s23  ;;  %p2806_p1 = scmp.lt.s32.totalorder %s2797_s23, %s2797_s23 }
  0x3a   : > { %p2800_p8 = pnand %p2798_p7, %p3048_p0  ;;  %p2807_p6 = por %p2806_p1, %p2805_p13 }
  0x3c   : > { %p2801_p11 = pneg %p2800_p8 }
  0x3e   : > { %p2808_p9 = pnand %p2807_p6, %p2801_p11 }
  0x40   : > { %2811 = shalt.err (!%p2808_p9)
}
  0x41   : > { %2436 = dma.hbm_to_vmem [thread:$0]  (!%p3032_p12), %s3257_s1, 2048, %s3036_s26, [#allocation3], %s2915_s14, %s2915_s14, %s2916_s16  }
  0x42   : > { %s2812_s17 = scalar_lea.hbm %s3261_s5, 4096 }
  0x43   : > { %p2813_p2 = scmp.ne.s32.totalorder %s3261_s5, %s2812_s17  ;;  %p2819_p7 = scmp.lt.u32.totalorder %s2812_s17, %s3261_s5 }
  0x45   : > { %p2815_p3 = pnand %p2813_p2, %p3048_p0 }
  0x47   : > { %p2816_p4 = pneg %p2815_p3 }
  0x49   : > { %p2821_p8 = pnand %p2819_p7, %p2816_p4 }
  0x4b   : > { %2824 = shalt.err (!%p2821_p8)
}
  0x4c   : > { %s2825_s23 = scalar_lea.vmem %s294_s28, 4096  ;;  %p2833_p6 = scmp.lt.s32.totalorder %s294_s28, %s294_s28 }
  0x4d   : > { %p2826_p11 = scmp.ne.s32.totalorder %s294_s28, %s2825_s23  ;;  %p2834_p9 = scmp.lt.s32.totalorder %s2825_s23, %s2825_s23 }
  0x4f   : > { %p2828_p13 = pnand %p2826_p11, %p3048_p0  ;;  %p2835_p5 = por %p2834_p9, %p2833_p6 }
  0x51   : > { %p2829_p1 = pneg %p2828_p13 }
  0x53   : > { %p2836_p10 = pnand %p2835_p5, %p2829_p1 }
  0x55   : > { %2839 = shalt.err (!%p2836_p10)
}
  0x56   : > { %s2917_s26 = smov 64   ;;  %s2918_s14 = smov 4  }
  0x57   : > { %2442 = dma.hbm_to_vmem [thread:$0]  (!%p3032_p12), %s3261_s5, 4096, %s294_s28, [#allocation6], %s2917_s26, %s2917_s26, %s2918_s14  }
  0x58   : > { %p3284_p2 = scmp.ne.s32.totalorder %s3281_s21, 0 }
  0x59   : > { %p3285_p3 = scmp.eq.s32.totalorder (!%p3284_p2), %s2994_s13, 0 }
  0x5a   : > { %325 = sbr.rel (%p3284_p2) target bundleno = 1110 (0x456), region = 56 }
  0x61   : > { %2885 = dma.done.wait (%p3285_p3), [#allocation3], 2048   ;;  %p3286_p0 = pmov %p3285_p3 }
  0x63   : > { %2887 = vsyncadd (%p3286_p0), [#allocation3], 4294965248  ;;  %p3287_p5 = pmov %p3286_p0 }
  0x64   : > { %p3288_p10 = pmov %p3286_p0 }
  0x65   : > { %2889 = dma.done.wait (%p3287_p5), [#allocation6], 20480  }
  0x66   : > { %2891 = vsyncadd (%p3288_p10), [#allocation6], 4294946816  ;;  %v2919_v0 = vmov 0   ;;  %p368_p12 = scmp.lt.s32.totalorder %s2994_s13, 1  ;;  %v2496_v1 = vld [vmem:[#allocation2 + $0x4] ss:$16 sps:$4 sm:$0xff]  }
  0x67   : > { %529 = vmatprep.mubr.bf16.mxu1 %v2919_v0  ;;  %v2498_v2 = vld [vmem:[#allocation2] ss:$16 sps:$4 sm:$0xff]   ;;  %497 = vmatprep.subr.bf16.mxu1 %v2496_v1  ;;  %v2499_v3 = vld [vmem:[#allocation2 + $0x24] ss:$16 sps:$4 sm:$0xff]   ;;  %v2510_v11 = vld [vmem:[#allocation2 + $0xc] ss:$16 sps:$4 sm:$0xff]  }
  0x68   : > { %s369_s18 = scalar_select %p368_p12, %s2994_s13, 1  ;;  %498 = vmatpush1.bf16.msra.mxu1 %v2498_v2  ;;  %v2501_v4 = vld [vmem:[#allocation2 + $0x20] ss:$16 sps:$4 sm:$0xff]   ;;  %v2502_v5 = vld [vmem:[#allocation2 + $0x44] ss:$16 sps:$4 sm:$0xff]   ;;  %vm493_vm0 = vcmask 523264  }
  0x69   : > { %499 = vmatprep.subr.bf16.mxu1 %v2499_v3  ;;  %v2504_v6 = vld [vmem:[#allocation2 + $0x40] ss:$16 sps:$4 sm:$0xff]   ;;  %v2505_v7 = vld [vmem:[#allocation2 + $0x64] ss:$16 sps:$4 sm:$0xff]   ;;  %v2508_v15 = vld [vmem:[#allocation2 + $0x8] ss:$16 sps:$4 sm:$0xff]  }
  0x6a   : > { %s2141_s21 = sshll.u32 %s369_s18, 3  ;;  %v2507_v8 = vld [vmem:[#allocation2 + $0x60] ss:$16 sps:$4 sm:$0xff]   ;;  %v2520_v10 = vld [vmem:[#allocation5 + $0x4] ss:$16 sps:$4 sm:$0xff]   ;;  %vm2921_vm1 = vmmov 0  }
  0x6b   : > { %s371_s11 = scalar_lea.vmem %s3256_s0, %s2141_s21  ;;  %1377 = vmatprep.subr.bf16.mxu0 %v2520_v10  ;;  %v2525_v12 = vld [vmem:[#allocation5] ss:$16 sps:$4 sm:$0xff]   ;;  %v2526_v14 = vld [vmem:[#allocation5 + $0x24] ss:$16 sps:$4 sm:$0xff]   ;;  %v2513_v16 = vld [vmem:[#allocation2 + $0x2c] ss:$16 sps:$4 sm:$0xff]  }
  0x6c   : > { %500 = vmatpush1.bf16.msra.mxu1 %v2501_v4  ;;  %v373_v9 = vld [vmem:[%s371_s11] sm:$0xff]  ;;  %1378 = vmatpush1.bf16.msra.mxu0 %v2525_v12  ;;  %v2511_v19 = vld [vmem:[#allocation2 + $0x28] ss:$16 sps:$4 sm:$0xff]   ;;  %v2516_v20 = vld [vmem:[#allocation2 + $0x4c] ss:$16 sps:$4 sm:$0xff]   ;;  %s365_s23 = sand.u32 1, %s2902_s10  }
  0x6d   : > { %501 = vmatprep.subr.bf16.mxu1 %v2502_v5  ;;  %v374_v13 = vpack.c.bf16 %v373_v9, %v373_v9  ;;  %1379 = vmatprep.subr.bf16.mxu0 %v2526_v14  ;;  %v2531_v17 = vld [vmem:[#allocation5 + $0x20] ss:$16 sps:$4 sm:$0xff]   ;;  %v2532_v18 = vld [vmem:[#allocation5 + $0x44] ss:$16 sps:$4 sm:$0xff]   ;;  %v2514_v23 = vld [vmem:[#allocation2 + $0x48] ss:$16 sps:$4 sm:$0xff]  }
  0x6e   : > { %v2537_v21 = vld [vmem:[#allocation5 + $0x40] ss:$16 sps:$4 sm:$0xff]   ;;  %v2538_v22 = vld [vmem:[#allocation5 + $0x64] ss:$16 sps:$4 sm:$0xff]   ;;  %v2519_v24 = vld [vmem:[#allocation2 + $0x6c] ss:$16 sps:$4 sm:$0xff]  }
  0x6f   : > { %v2543_v25 = vld [vmem:[#allocation5 + $0x60] ss:$16 sps:$4 sm:$0xff]   ;;  %v2544_v26 = vld [vmem:[#allocation5 + $0x84] ss:$16 sps:$4 sm:$0xff]   ;;  %v2517_v27 = vld [vmem:[#allocation2 + $0x68] ss:$16 sps:$4 sm:$0xff]  }
  0x70   : > { %502 = vmatpush1.bf16.msra.mxu1 %v2504_v6  ;;  %1380 = vmatpush1.bf16.msra.mxu0 %v2531_v17  ;;  %v2524_v28 = vld [vmem:[#allocation5 + $0xc] ss:$16 sps:$4 sm:$0xff]   ;;  %v2549_v29 = vld [vmem:[#allocation5 + $0x80] ss:$16 sps:$4 sm:$0xff]   ;;  %v2550_v30 = vld [vmem:[#allocation5 + $0xa4] ss:$16 sps:$4 sm:$0xff]  }
  0x71   : > { %503 = vmatprep.subr.bf16.mxu1 %v2505_v7  ;;  %1381 = vmatprep.subr.bf16.mxu0 %v2532_v18  ;;  %v2522_v31 = vld [vmem:[#allocation5 + $0x8] ss:$16 sps:$4 sm:$0xff]   ;;  %v2530_v32 = vld [vmem:[#allocation5 + $0x2c] ss:$16 sps:$4 sm:$0xff]   ;;  %v2555_v33 = vld [vmem:[#allocation5 + $0xa0] ss:$16 sps:$4 sm:$0xff]  }
  0x72   : > { %v2556_v34 = vld [vmem:[#allocation5 + $0xc4] ss:$16 sps:$4 sm:$0xff]   ;;  %v2528_v35 = vld [vmem:[#allocation5 + $0x28] ss:$16 sps:$4 sm:$0xff]   ;;  %v2536_v36 = vld [vmem:[#allocation5 + $0x4c] ss:$16 sps:$4 sm:$0xff]  }
  0x73   : > { %v2561_v37 = vld [vmem:[#allocation5 + $0xc0] ss:$16 sps:$4 sm:$0xff]   ;;  %v2562_v38 = vld [vmem:[#allocation5 + $0xe4] ss:$16 sps:$4 sm:$0xff]   ;;  %v2534_v39 = vld [vmem:[#allocation5 + $0x48] ss:$16 sps:$4 sm:$0xff]  }
  0x74   : > { %504 = vmatpush1.bf16.msra.mxu1 %v2507_v8  ;;  %1382 = vmatpush1.bf16.msra.mxu0 %v2537_v21  ;;  %v2542_v40 = vld [vmem:[#allocation5 + $0x6c] ss:$16 sps:$4 sm:$0xff]   ;;  %v2567_v41 = vld [vmem:[#allocation5 + $0xe0] ss:$16 sps:$4 sm:$0xff]   ;;  %v2568_v42 = vld [vmem:[#allocation5 + $0x104] ss:$16 sps:$4 sm:$0xff]  }
  0x75   : > { %538 = vmatprep.subr.bf16.mxu1 %v2510_v11  ;;  %1383 = vmatprep.subr.bf16.mxu0 %v2538_v22  ;;  %v2540_v43 = vld [vmem:[#allocation5 + $0x68] ss:$16 sps:$4 sm:$0xff]   ;;  %v2548_v44 = vld [vmem:[#allocation5 + $0x8c] ss:$16 sps:$4 sm:$0xff]   ;;  %v2573_v45 = vld [vmem:[#allocation5 + $0x100] ss:$16 sps:$4 sm:$0xff]   ;;  %v393_v22 = vlaneseq }
  0x76   : > { %v2574_v46 = vld [vmem:[#allocation5 + $0x124] ss:$16 sps:$4 sm:$0xff]   ;;  %v2546_v47 = vld [vmem:[#allocation5 + $0x88] ss:$16 sps:$4 sm:$0xff]   ;;  %v2554_v48 = vld [vmem:[#allocation5 + $0xac] ss:$16 sps:$4 sm:$0xff]  }
  0x77   : > { %2158 = vmatmul.mubr.msk.bf16.vlgmr.msra.gmra.mrb[0].mxu1 %vm493_vm0, %v374_v13  ;;  %v2579_v49 = vld [vmem:[#allocation5 + $0x120] ss:$16 sps:$4 sm:$0xff]   ;;  %v2580_v50 = vld [vmem:[#allocation5 + $0x144] ss:$16 sps:$4 sm:$0xff]   ;;  %v2552_v51 = vld [vmem:[#allocation5 + $0xa8] ss:$16 sps:$4 sm:$0xff]  }
  0x78   : > { %539 = vmatpush1.bf16.msra.mxu1 %v2508_v15  ;;  %570 = vmatprep.mubr.bf16.mxu1 %v2919_v0  ;;  %v2560_v52 = vld [vmem:[#allocation5 + $0xcc] ss:$16 sps:$4 sm:$0xff]   ;;  %v2585_v53 = vld [vmem:[#allocation5 + $0x140] ss:$16 sps:$4 sm:$0xff]   ;;  %v2586_v54 = vld [vmem:[#allocation5 + $0x164] ss:$16 sps:$4 sm:$0xff]  }
  0x79   : > { %540 = vmatprep.subr.bf16.mxu1 %v2513_v16  ;;  %1384 = vmatpush1.bf16.msra.mxu0 %v2543_v25  ;;  %v2558_v55 = vld [vmem:[#allocation5 + $0xc8] ss:$16 sps:$4 sm:$0xff]   ;;  %v2566_v56 = vld [vmem:[#allocation5 + $0xec] ss:$16 sps:$4 sm:$0xff]   ;;  %v2591_v57 = vld [vmem:[#allocation5 + $0x160] ss:$16 sps:$4 sm:$0xff]  }
  0x7a   : > { %1385 = vmatprep.subr.bf16.mxu0 %v2544_v26  ;;  %v2592_v58 = vld [vmem:[#allocation5 + $0x184] ss:$16 sps:$4 sm:$0xff]   ;;  %v2564_v59 = vld [vmem:[#allocation5 + $0xe8] ss:$16 sps:$4 sm:$0xff]   ;;  %v2572_v60 = vld [vmem:[#allocation5 + $0x10c] ss:$16 sps:$4 sm:$0xff]  }
  0x7b   : > { %v2597_v61 = vld [vmem:[#allocation5 + $0x180] ss:$16 sps:$4 sm:$0xff]   ;;  %v2598_v62 = vld [vmem:[#allocation5 + $0x1a4] ss:$16 sps:$4 sm:$0xff]   ;;  %v2570_v63 = vld [vmem:[#allocation5 + $0x108] ss:$16 sps:$4 sm:$0xff]  }
  0x7c   : > { %541 = vmatpush1.bf16.msra.mxu1 %v2511_v19  ;;  %v2578_v1 = vld [vmem:[#allocation5 + $0x12c] ss:$16 sps:$4 sm:$0xff]   ;;  %v2603_v2 = vld [vmem:[#allocation5 + $0x1a0] ss:$16 sps:$4 sm:$0xff]   ;;  %v2576_v3 = vld [vmem:[#allocation5 + $0x128] ss:$16 sps:$4 sm:$0xff]  }
  0x7d   : > { %542 = vmatprep.subr.bf16.mxu1 %v2516_v20  ;;  %1386 = vmatpush1.bf16.msra.mxu0 %v2549_v29  ;;  %v2584_v4 = vld [vmem:[#allocation5 + $0x14c] ss:$16 sps:$4 sm:$0xff]   ;;  %v2582_v5 = vld [vmem:[#allocation5 + $0x148] ss:$16 sps:$4 sm:$0xff]   ;;  %v2604_v12 = vld [vmem:[#allocation5 + $0x1c4] ss:$16 sps:$4 sm:$0xff]  }
  0x7e   : > { %1387 = vmatprep.subr.bf16.mxu0 %v2550_v30  ;;  %v2590_v6 = vld [vmem:[#allocation5 + $0x16c] ss:$16 sps:$4 sm:$0xff]   ;;  %v2588_v7 = vld [vmem:[#allocation5 + $0x168] ss:$16 sps:$4 sm:$0xff]   ;;  %v2609_v15 = vld [vmem:[#allocation5 + $0x1c0] ss:$16 sps:$4 sm:$0xff]  }
  0x7f   : > { %v2596_v8 = vld [vmem:[#allocation5 + $0x18c] ss:$16 sps:$4 sm:$0xff]   ;;  %v2594_v9 = vld [vmem:[#allocation5 + $0x188] ss:$16 sps:$4 sm:$0xff]   ;;  %v2610_v16 = vld [vmem:[#allocation5 + $0x1e4] ss:$16 sps:$4 sm:$0xff]  }
  0x80   : > { %543 = vmatpush1.bf16.msra.mxu1 %v2514_v23  ;;  %v2602_v10 = vld [vmem:[#allocation5 + $0x1ac] ss:$16 sps:$4 sm:$0xff]   ;;  %v2600_v11 = vld [vmem:[#allocation5 + $0x1a8] ss:$16 sps:$4 sm:$0xff]   ;;  %v2615_v19 = vld [vmem:[#allocation5 + $0x1e0] ss:$16 sps:$4 sm:$0xff]  }
  0x81   : > { %544 = vmatprep.subr.bf16.mxu1 %v2519_v24  ;;  %1388 = vmatpush1.bf16.msra.mxu0 %v2555_v33  ;;  %v2606_v14 = vld [vmem:[#allocation5 + $0x1c8] ss:$16 sps:$4 sm:$0xff]   ;;  %v2614_v17 = vld [vmem:[#allocation5 + $0x1ec] ss:$16 sps:$4 sm:$0xff]   ;;  %v2618_v20 = vld [vmem:[#allocation5 + $0x204] ss:$16 sps:$4 sm:$0xff]  }
  0x82   : > { %1389 = vmatprep.subr.bf16.mxu0 %v2556_v34  ;;  %v2612_v18 = vld [vmem:[#allocation5 + $0x1e8] ss:$16 sps:$4 sm:$0xff]   ;;  %v2621_v21 = vld [vmem:[#allocation5 + $0x20c] ss:$16 sps:$4 sm:$0xff]   ;;  %v3131_v23 = vshrl.u32 %v393_v22, 7  ;;  %s2140_s26 = sshll.u32 %s365_s23, 3 }
  0x83   : > { %v3137_v25 = vld [vmem:[%s3258_s2] sm:$0xf]  ;;  %s2331_s14 = sshll.u32 %s2994_s13, 7  ;;  %s367_s16 = scalar_lea.vmem [#allocation8], %s2140_s26 }
  0x84   : > { %545 = vmatpush1.bf16.msra.mxu1 %v2517_v27  ;;  %v395_v24 = vsub.s32 0, %v3131_v23  ;;  %v399_v26 = vsub.s32 1, %v3131_v23  ;;  %s2040_s30 = sshll.u32 %s367_s16, 4  ;;  %s3213_s24 = scalar_lea.hbm %s3265_s9, %s2331_s14  ;;  %s3215_s30 = int_to_ptr.vmem [resolvable:$true] %s2040_s30 }
  0x85   : > { %1459 = vmatprep.subr.bf16.mxu1 %v2524_v28  ;;  %1390 = vmatpush1.bf16.msra.mxu0 %v2561_v37  ;;  %s2027_s28 = scalar_lea.sflag [#allocation4], %s365_s23  ;;  %s2840_s13 = scalar_lea.vmem %s3215_s30, 128 }
  0x86   : > { %1391 = vmatprep.subr.bf16.mxu0 %v2562_v38  ;;  %v396_v27 = vrot.slane %v3137_v25, %v395_v24  ;;  %v400_v28 = vrot.slane %v3137_v25, %v399_v26  ;;  %v2616_v38 = vld [vmem:[#allocation5 + $0x200] ss:$16 sps:$4 sm:$0xff]   ;;  %p2841_p4 = scmp.ne.s32.totalorder %s3215_s30, %s2840_s13  ;;  %p3289_p7 = scmp.ne.s32.totalorder %s3278_s19, 0 }
  0x87   : > { %2159 = vmatmul.mubr.msk.bf16.vlgmr.msra.gmra.mrb[4].mxu1 %vm493_vm0, %v374_v13  ;;  %v2608_v13 = vld [vmem:[#allocation5 + $0x1cc] ss:$16 sps:$4 sm:$0xff]   ;;  %s2922_s11 = smov [#allocation8]  }
  0x88   : > { %1460 = vmatpush1.bf16.msra.mxu1 %v2522_v31  ;;  %p2842_p8 = pnand %p2841_p4, %p3289_p7  ;;  %s2844_s15 = sshll.u32 %s2922_s11, 4  ;;  %s2845_s15 = int_to_ptr.vmem [resolvable:$false] %s2844_s15 }
  0x89   : > { %1461 = vmatprep.subr.bf16.mxu1 %v2530_v32  ;;  %1392 = vmatpush1.bf16.msra.mxu0 %v2567_v41  ;;  %v2624_v41 = vld [vmem:[#allocation5 + $0x224] ss:$16 sps:$4 sm:$0xff]   ;;  %s2846_s20 = scalar_lea.vmem %s2845_s15, 256  ;;  %p2847_p13 = scmp.lt.s32.totalorder %s3215_s30, %s2845_s15 }
  0x8a   : > { %1393 = vmatprep.subr.bf16.mxu0 %v2568_v42  ;;  %v2627_v42 = vld [vmem:[#allocation5 + $0x22c] ss:$16 sps:$4 sm:$0xff]   ;;  %p2843_p11 = pneg %p2842_p8  ;;  %p2848_p1 = scmp.lt.s32.totalorder %s2846_s20, %s2840_s13 }
  0x8c   : > { %1462 = vmatpush1.bf16.msra.mxu1 %v2528_v35  ;;  %p2849_p6 = por %p2848_p1, %p2847_p13 }
  0x8d   : > { %1463 = vmatprep.subr.bf16.mxu1 %v2536_v36  ;;  %1394 = vmatpush1.bf16.msra.mxu0 %v2573_v45  ;;  %v407_v45 = vsub.s32 3, %v3131_v23 }
  0x8e   : > { %1395 = vmatprep.subr.bf16.mxu0 %v2574_v46  ;;  %v2630_v46 = vld [vmem:[#allocation5 + $0x244] ss:$16 sps:$4 sm:$0xff]   ;;  %p2850_p9 = pnand %p2849_p6, %p2843_p11 }
  0x90   : > { %1464 = vmatpush1.bf16.msra.mxu1 %v2534_v39  ;;  %v2619_v39 = vld [vmem:[#allocation5 + $0x208] ss:$16 sps:$4 sm:$0xff]  }
  0x91   : > { %1465 = vmatprep.subr.bf16.mxu1 %v2542_v40  ;;  %1396 = vmatpush1.bf16.msra.mxu0 %v2579_v49  ;;  %v2631_v49 = vld [vmem:[#allocation5 + $0x248] ss:$16 sps:$4 sm:$0xff]  }
  0x92   : > { %1397 = vmatprep.subr.bf16.mxu0 %v2580_v50  ;;  %v408_v50 = vrot.slane %v3137_v25, %v407_v45 }
  0x94   : > { %1466 = vmatpush1.bf16.msra.mxu1 %v2540_v43  ;;  %v2622_v43 = vld [vmem:[#allocation5 + $0x220] ss:$16 sps:$4 sm:$0xff]  }
  0x95   : > { %1467 = vmatprep.subr.bf16.mxu1 %v2548_v44  ;;  %1398 = vmatpush1.bf16.msra.mxu0 %v2585_v53  ;;  %v2625_v44 = vld [vmem:[#allocation5 + $0x228] ss:$16 sps:$4 sm:$0xff]  }
  0x96   : > { %1399 = vmatprep.subr.bf16.mxu0 %v2586_v54 }
  0x98   : > { %1468 = vmatpush1.bf16.msra.mxu1 %v2546_v47  ;;  %v2633_v47 = vld [vmem:[#allocation5 + $0x24c] ss:$16 sps:$4 sm:$0xff]  }
  0x99   : > { %1469 = vmatprep.subr.bf16.mxu1 %v2554_v48  ;;  %1400 = vmatpush1.bf16.msra.mxu0 %v2591_v57  ;;  %v2628_v48 = vld [vmem:[#allocation5 + $0x240] ss:$16 sps:$4 sm:$0xff]  }
  0x9a   : > { %1401 = vmatprep.subr.bf16.mxu0 %v2592_v58 }
  0x9c   : > { %1470 = vmatpush1.bf16.msra.mxu1 %v2552_v51  ;;  %v2636_v51 = vld [vmem:[#allocation5 + $0x264] ss:$16 sps:$4 sm:$0xff]  }
  0x9d   : > { %1471 = vmatprep.subr.bf16.mxu1 %v2560_v52  ;;  %1402 = vmatpush1.bf16.msra.mxu0 %v2597_v61  ;;  %v2639_v52 = vld [vmem:[#allocation5 + $0x26c] ss:$16 sps:$4 sm:$0xff]  }
  0x9e   : > { %1403 = vmatprep.subr.bf16.mxu0 %v2598_v62 }
  0xa0   : > { %1472 = vmatpush1.bf16.msra.mxu1 %v2558_v55  ;;  %v2634_v55 = vld [vmem:[#allocation5 + $0x260] ss:$16 sps:$4 sm:$0xff]  }
  0xa1   : > { %1473 = vmatprep.subr.bf16.mxu1 %v2566_v56  ;;  %1404 = vmatpush1.bf16.msra.mxu0 %v2603_v2  ;;  %v2637_v56 = vld [vmem:[#allocation5 + $0x268] ss:$16 sps:$4 sm:$0xff]  }
  0xa2   : > { %1405 = vmatprep.subr.bf16.mxu0 %v2604_v12  ;;  %v2663_v12 = vld [vmem:[#allocation5 + $0x2ec] ss:$16 sps:$4 sm:$0xff]  }
  0xa4   : > { %1474 = vmatpush1.bf16.msra.mxu1 %v2564_v59  ;;  %v2642_v59 = vld [vmem:[#allocation5 + $0x284] ss:$16 sps:$4 sm:$0xff]  }
  0xa5   : > { %1475 = vmatprep.subr.bf16.mxu1 %v2572_v60  ;;  %1406 = vmatpush1.bf16.msra.mxu0 %v2609_v15  ;;  %v2645_v60 = vld [vmem:[#allocation5 + $0x28c] ss:$16 sps:$4 sm:$0xff]   ;;  %v2666_v15 = vld [vmem:[#allocation5 + $0x304] ss:$16 sps:$4 sm:$0xff]  }
  0xa6   : > { %1407 = vmatprep.subr.bf16.mxu0 %v2610_v16  ;;  %v2669_v16 = vld [vmem:[#allocation5 + $0x30c] ss:$16 sps:$4 sm:$0xff]  }
  0xa8   : > { %1476 = vmatpush1.bf16.msra.mxu1 %v2570_v63  ;;  %v2640_v63 = vld [vmem:[#allocation5 + $0x280] ss:$16 sps:$4 sm:$0xff]  }
  0xa9   : > { %1477 = vmatprep.subr.bf16.mxu1 %v2578_v1  ;;  %1408 = vmatpush1.bf16.msra.mxu0 %v2615_v19  ;;  %v2643_v1 = vld [vmem:[#allocation5 + $0x288] ss:$16 sps:$4 sm:$0xff]   ;;  %v2672_v19 = vld [vmem:[#allocation5 + $0x324] ss:$16 sps:$4 sm:$0xff]  }
  0xaa   : > { %1418 = vmatprep.subr.bf16.mxu0 %v2618_v20  ;;  %v2675_v20 = vld [vmem:[#allocation5 + $0x32c] ss:$16 sps:$4 sm:$0xff]  }
  0xac   : > { %1478 = vmatpush1.bf16.msra.mxu1 %v2576_v3  ;;  %v2648_v3 = vld [vmem:[#allocation5 + $0x2a4] ss:$16 sps:$4 sm:$0xff]  }
  0xad   : > { %1479 = vmatprep.subr.bf16.mxu1 %v2584_v4  ;;  %v2651_v4 = vld [vmem:[#allocation5 + $0x2ac] ss:$16 sps:$4 sm:$0xff]  }
  0xb0   : > { %1480 = vmatpush1.bf16.msra.mxu1 %v2582_v5  ;;  %v2646_v5 = vld [vmem:[#allocation5 + $0x2a0] ss:$16 sps:$4 sm:$0xff]  }
  0xb1   : > { %1481 = vmatprep.subr.bf16.mxu1 %v2590_v6  ;;  %v2649_v6 = vld [vmem:[#allocation5 + $0x2a8] ss:$16 sps:$4 sm:$0xff]  }
  0xb4   : > { %1482 = vmatpush1.bf16.msra.mxu1 %v2588_v7  ;;  %v2654_v7 = vld [vmem:[#allocation5 + $0x2c4] ss:$16 sps:$4 sm:$0xff]  }
  0xb5   : > { %1483 = vmatprep.subr.bf16.mxu1 %v2596_v8  ;;  %v2657_v8 = vld [vmem:[#allocation5 + $0x2cc] ss:$16 sps:$4 sm:$0xff]  }
  0xb8   : > { %1484 = vmatpush1.bf16.msra.mxu1 %v2594_v9  ;;  %v2652_v9 = vld [vmem:[#allocation5 + $0x2c0] ss:$16 sps:$4 sm:$0xff]  }
  0xb9   : > { %1485 = vmatprep.subr.bf16.mxu1 %v2602_v10  ;;  %v2655_v10 = vld [vmem:[#allocation5 + $0x2c8] ss:$16 sps:$4 sm:$0xff]  }
  0xbc   : > { %1486 = vmatpush1.bf16.msra.mxu1 %v2600_v11  ;;  %v2660_v11 = vld [vmem:[#allocation5 + $0x2e4] ss:$16 sps:$4 sm:$0xff]  }
  0xbd   : > { %1487 = vmatprep.subr.bf16.mxu1 %v2608_v13  ;;  %v2658_v13 = vld [vmem:[#allocation5 + $0x2e0] ss:$16 sps:$4 sm:$0xff]  }
  0xc0   : > { %1488 = vmatpush1.bf16.msra.mxu1 %v2606_v14  ;;  %v2661_v14 = vld [vmem:[#allocation5 + $0x2e8] ss:$16 sps:$4 sm:$0xff]  }
  0xc1   : > { %1489 = vmatprep.subr.bf16.mxu1 %v2614_v17  ;;  %v2664_v17 = vld [vmem:[#allocation5 + $0x300] ss:$16 sps:$4 sm:$0xff]  }
  0xc4   : > { %1490 = vmatpush1.bf16.msra.mxu1 %v2612_v18  ;;  %v2667_v18 = vld [vmem:[#allocation5 + $0x308] ss:$16 sps:$4 sm:$0xff]  }
  0xc5   : > { %1500 = vmatprep.subr.bf16.mxu1 %v2621_v21  ;;  %v2670_v21 = vld [vmem:[#allocation5 + $0x320] ss:$16 sps:$4 sm:$0xff]  }
 0x14a   : > { %v531_v29 = vpop.f32.mrb[0].mxu1 }
 0x14b   : > { %v532_v30 = vadd.f32 %v531_v29, %v396_v27  ;;  %v533_v31 = vpop.f32.mrb[1].mxu1  ;;  %v2673_v27 = vld [vmem:[#allocation5 + $0x328] ss:$16 sps:$4 sm:$0xff]   ;;  %v2681_v29 = vld [vmem:[#allocation5 + $0x34c] ss:$16 sps:$4 sm:$0xff]  }
 0x14c   : > { %v534_v32 = vadd.f32 %v533_v31, %v400_v28  ;;  %v535_v33 = vpop.f32.mrb[2].mxu1  ;;  %v2678_v28 = vld [vmem:[#allocation5 + $0x344] ss:$16 sps:$4 sm:$0xff]   ;;  %v2679_v31 = vld [vmem:[#allocation5 + $0x348] ss:$16 sps:$4 sm:$0xff]  }
 0x14d   : > { %v579_v34 = vpack.c.bf16 %v532_v30, %v532_v30  ;;  %v536_v35 = vpop.f32.mrb[3].mxu1  ;;  %v2676_v30 = vld [vmem:[#allocation5 + $0x340] ss:$16 sps:$4 sm:$0xff]   ;;  %v2687_v33 = vld [vmem:[#allocation5 + $0x36c] ss:$16 sps:$4 sm:$0xff]  }
 0x14e   : > { %v580_v36 = vpack.c.bf16 %v534_v32, %v534_v32  ;;  %v2684_v32 = vld [vmem:[#allocation5 + $0x364] ss:$16 sps:$4 sm:$0xff]   ;;  %v2685_v35 = vld [vmem:[#allocation5 + $0x368] ss:$16 sps:$4 sm:$0xff]  }
 0x14f   : > { %v583_v40 = vmax.bf16 %v2919_v0, %v579_v34  ;;  %v2682_v34 = vld [vmem:[#allocation5 + $0x360] ss:$16 sps:$4 sm:$0xff]  }
 0x150   : > { %v584_v37 = vmax.bf16 %v2919_v0, %v580_v36  ;;  %v2690_v36 = vld [vmem:[#allocation5 + $0x384] ss:$16 sps:$4 sm:$0xff]  }
 0x152   : > { %1409 = vmatprep.mubr.bf16.mxu0 %v584_v37  ;;  %1491 = vmatprep.mubr.bf16.mxu1 %v584_v37  ;;  %v2693_v37 = vld [vmem:[#allocation5 + $0x38c] ss:$16 sps:$4 sm:$0xff]  }
 0x153   : > { %1410 = vmatmul.mubr.bf16.vlgmr.msra.gmra.mrb[0].mxu0 %v583_v40  ;;  %1492 = vmatmul.mubr.bf16.vlgmr.msra.gmra.mrb[8].mxu1 %v583_v40  ;;  %v403_v40 = vsub.s32 2, %v3131_v23 }
 0x154   : > { %1419 = vmatpush1.bf16.msra.mxu0 %v2616_v38  ;;  %1501 = vmatpush1.bf16.msra.mxu1 %v2619_v39  ;;  %v2688_v38 = vld [vmem:[#allocation5 + $0x380] ss:$16 sps:$4 sm:$0xff]   ;;  %v2691_v39 = vld [vmem:[#allocation5 + $0x388] ss:$16 sps:$4 sm:$0xff]  }
 0x155   : > { %1420 = vmatprep.subr.bf16.mxu0 %v2624_v41  ;;  %1502 = vmatprep.subr.bf16.mxu1 %v2627_v42  ;;  %v2696_v41 = vld [vmem:[#allocation5 + $0x3a4] ss:$16 sps:$4 sm:$0xff]   ;;  %v2699_v42 = vld [vmem:[#allocation5 + $0x3ac] ss:$16 sps:$4 sm:$0xff]  }
 0x158   : > { %1421 = vmatpush1.bf16.msra.mxu0 %v2622_v43  ;;  %1503 = vmatpush1.bf16.msra.mxu1 %v2625_v44  ;;  %v2694_v43 = vld [vmem:[#allocation5 + $0x3a0] ss:$16 sps:$4 sm:$0xff]   ;;  %v2697_v44 = vld [vmem:[#allocation5 + $0x3a8] ss:$16 sps:$4 sm:$0xff]  }
 0x159   : > { %1422 = vmatprep.subr.bf16.mxu0 %v2630_v46  ;;  %1504 = vmatprep.subr.bf16.mxu1 %v2633_v47  ;;  %v404_v46 = vrot.slane %v3137_v25, %v403_v40  ;;  %v2702_v47 = vld [vmem:[#allocation5 + $0x3c4] ss:$16 sps:$4 sm:$0xff]  }
 0x15a   : > { %v3152_v53 = vpop.f32.mrb[4].mxu1  ;;  %v2712_v25 = vld [vmem:[#allocation7 + $0x40] sm:$0xff]  }
 0x15b   : > { %v574_v54 = vpop.f32.mrb[5].mxu1 }
 0x15c   : > { %1423 = vmatpush1.bf16.msra.mxu0 %v2628_v48  ;;  %1505 = vmatpush1.bf16.msra.mxu1 %v2631_v49  ;;  %v575_v57 = vadd.f32 %v574_v54, %v408_v50  ;;  %v576_v58 = vpop.f32.mrb[6].mxu1  ;;  %v2705_v48 = vld [vmem:[#allocation5 + $0x3cc] ss:$16 sps:$4 sm:$0xff]   ;;  %v2700_v49 = vld [vmem:[#allocation5 + $0x3c0] ss:$16 sps:$4 sm:$0xff]  }
 0x15d   : > { %1424 = vmatprep.subr.bf16.mxu0 %v2636_v51  ;;  %1506 = vmatprep.subr.bf16.mxu1 %v2639_v52  ;;  %v577_v61 = vpop.f32.mrb[7].mxu1  ;;  %v2703_v50 = vld [vmem:[#allocation5 + $0x3c8] ss:$16 sps:$4 sm:$0xff]   ;;  %v573_v51 = vadd.f32 %v3152_v53, %v404_v46  ;;  %v2708_v52 = vld [vmem:[#allocation5 + $0x3e4] ss:$16 sps:$4 sm:$0xff]  }
 0x15e   : > { %v582_v62 = vpack.c.bf16 %v575_v57, %v575_v57  ;;  %v2711_v54 = vld [vmem:[#allocation5 + $0x3ec] ss:$16 sps:$4 sm:$0xff]   ;;  %v2713_v58 = vld [vmem:[#allocation7 + $0xc0] sm:$0xff]  }
 0x15f   : > { %v581_v57 = vpack.c.bf16 %v573_v51, %v573_v51  ;;  %v2716_v53 = vld [vmem:[#allocation7 + $0x48] sm:$0xff]  }
 0x160   : > { %1425 = vmatpush1.bf16.msra.mxu0 %v2634_v55  ;;  %1507 = vmatpush1.bf16.msra.mxu1 %v2637_v56  ;;  %v586_v2 = vmax.bf16 %v2919_v0, %v582_v62  ;;  %v2706_v55 = vld [vmem:[#allocation5 + $0x3e0] ss:$16 sps:$4 sm:$0xff]   ;;  %v2709_v56 = vld [vmem:[#allocation5 + $0x3e8] ss:$16 sps:$4 sm:$0xff]  }
 0x161   : > { %1426 = vmatprep.subr.bf16.mxu0 %v2642_v59  ;;  %1508 = vmatprep.subr.bf16.mxu1 %v2645_v60  ;;  %v2714_v59 = vld [vmem:[#allocation7] sm:$0xff]   ;;  %v585_v61 = vmax.bf16 %v2919_v0, %v581_v57  ;;  %v2717_v62 = vld [vmem:[#allocation7 + $0xc8] sm:$0xff]   ;;  %v2746_v57 = vld [vmem:[%s3263_s7 + $0x10] sm:$0xff]  }
 0x162   : > { %1450 = vmatprep.mubr.bf16.mxu0 %v586_v2  ;;  %1532 = vmatprep.mubr.bf16.mxu1 %v586_v2  ;;  %v2715_v60 = vld [vmem:[#allocation7 + $0x80] sm:$0xff]   ;;  %v2720_v2 = vld [vmem:[#allocation7 + $0x50] sm:$0xff]  }
 0x164   : > { %1427 = vmatpush1.bf16.msra.mxu0 %v2640_v63  ;;  %1509 = vmatpush1.bf16.msra.mxu1 %v2643_v1  ;;  %v2718_v63 = vld [vmem:[#allocation7 + $0x8] sm:$0xff]  }
 0x165   : > { %1428 = vmatprep.subr.bf16.mxu0 %v2648_v3  ;;  %1510 = vmatprep.subr.bf16.mxu1 %v2651_v4  ;;  %v2719_v1 = vld [vmem:[#allocation7 + $0x88] sm:$0xff]   ;;  %v2721_v3 = vld [vmem:[#allocation7 + $0xd0] sm:$0xff]  }
 0x166   : > { %v2722_v4 = vld [vmem:[#allocation7 + $0x10] sm:$0xff]  }
 0x168   : > { %1429 = vmatpush1.bf16.msra.mxu0 %v2646_v5  ;;  %1511 = vmatpush1.bf16.msra.mxu1 %v2649_v6  ;;  %v2723_v5 = vld [vmem:[#allocation7 + $0x90] sm:$0xff]   ;;  %v2724_v6 = vld [vmem:[#allocation7 + $0x58] sm:$0xff]  }
 0x169   : > { %1430 = vmatprep.subr.bf16.mxu0 %v2654_v7  ;;  %1512 = vmatprep.subr.bf16.mxu1 %v2657_v8  ;;  %v2725_v7 = vld [vmem:[#allocation7 + $0xd8] sm:$0xff]  }
 0x16a   : > { %v2726_v8 = vld [vmem:[#allocation7 + $0x18] sm:$0xff]  }
 0x16c   : > { %1431 = vmatpush1.bf16.msra.mxu0 %v2652_v9  ;;  %1513 = vmatpush1.bf16.msra.mxu1 %v2655_v10  ;;  %v2727_v9 = vld [vmem:[#allocation7 + $0x98] sm:$0xff]   ;;  %v2728_v10 = vld [vmem:[#allocation7 + $0x60] sm:$0xff]  }
 0x16d   : > { %1432 = vmatprep.subr.bf16.mxu0 %v2660_v11  ;;  %1514 = vmatprep.subr.bf16.mxu1 %v2663_v12  ;;  %v2729_v11 = vld [vmem:[#allocation7 + $0xe0] sm:$0xff]  }
 0x16e   : > { %v2730_v12 = vld [vmem:[#allocation7 + $0x20] sm:$0xff]  }
 0x170   : > { %1433 = vmatpush1.bf16.msra.mxu0 %v2658_v13  ;;  %1515 = vmatpush1.bf16.msra.mxu1 %v2661_v14  ;;  %v2731_v13 = vld [vmem:[#allocation7 + $0xa0] sm:$0xff]   ;;  %v2732_v14 = vld [vmem:[#allocation7 + $0x68] sm:$0xff]  }
 0x171   : > { %1434 = vmatprep.subr.bf16.mxu0 %v2666_v15  ;;  %1516 = vmatprep.subr.bf16.mxu1 %v2669_v16  ;;  %v2733_v15 = vld [vmem:[#allocation7 + $0xe8] sm:$0xff]  }
 0x172   : > { %v2734_v16 = vld [vmem:[#allocation7 + $0x28] sm:$0xff]  }
 0x174   : > { %1435 = vmatpush1.bf16.msra.mxu0 %v2664_v17  ;;  %1517 = vmatpush1.bf16.msra.mxu1 %v2667_v18  ;;  %v2735_v17 = vld [vmem:[#allocation7 + $0xa8] sm:$0xff]   ;;  %v2736_v18 = vld [vmem:[#allocation7 + $0x70] sm:$0xff]  }
 0x175   : > { %1436 = vmatprep.subr.bf16.mxu0 %v2672_v19  ;;  %1518 = vmatprep.subr.bf16.mxu1 %v2675_v20  ;;  %v2737_v19 = vld [vmem:[#allocation7 + $0xf0] sm:$0xff]  }
 0x176   : > { %v2738_v20 = vld [vmem:[#allocation7 + $0x30] sm:$0xff]  }
 0x178   : > { %1437 = vmatpush1.bf16.msra.mxu0 %v2670_v21  ;;  %1519 = vmatpush1.bf16.msra.mxu1 %v2673_v27  ;;  %v2739_v21 = vld [vmem:[#allocation7 + $0xb0] sm:$0xff]   ;;  %v2740_v27 = vld [vmem:[#allocation7 + $0x78] sm:$0xff]  }
 0x179   : > { %1438 = vmatprep.subr.bf16.mxu0 %v2678_v28  ;;  %1520 = vmatprep.subr.bf16.mxu1 %v2681_v29  ;;  %v2741_v28 = vld [vmem:[#allocation7 + $0xf8] sm:$0xff]  }
 0x17a   : > { %v2742_v29 = vld [vmem:[#allocation7 + $0x38] sm:$0xff]  }
 0x17c   : > { %1439 = vmatpush1.bf16.msra.mxu0 %v2676_v30  ;;  %1521 = vmatpush1.bf16.msra.mxu1 %v2679_v31  ;;  %v2743_v30 = vld [vmem:[#allocation7 + $0xb8] sm:$0xff]   ;;  %v2920_v31 = vmov 0.0  }
 0x17d   : > { %1440 = vmatprep.subr.bf16.mxu0 %v2684_v32  ;;  %1522 = vmatprep.subr.bf16.mxu1 %v2687_v33  ;;  %v715_v32 = vld [vmem:[%s3260_s4] sm:$0xf] }
 0x17e   : > { %v720_v33 = vrot.slane %v715_v32, %v395_v24 }
 0x180   : > { %1441 = vmatpush1.bf16.msra.mxu0 %v2682_v34  ;;  %1523 = vmatpush1.bf16.msra.mxu1 %v2685_v35  ;;  %v728_v34 = vrot.slane %v715_v32, %v403_v40  ;;  %v724_v35 = vrot.slane %v715_v32, %v399_v26 }
 0x181   : > { %1442 = vmatprep.subr.bf16.mxu0 %v2690_v36  ;;  %1524 = vmatprep.subr.bf16.mxu1 %v2693_v37  ;;  %v732_v36 = vrot.slane %v715_v32, %v407_v45  ;;  %v2744_v45 = vld [vmem:[%s3263_s7] sm:$0xff]   ;;  %v2022_v32 = vand.u32 127, %v393_v22 }
 0x183   : > { %vm2023_vm3 = vcmp.ge.s32.totalorder %v2022_v32, 32 }
 0x184   : > { %1443 = vmatpush1.bf16.msra.mxu0 %v2688_v38  ;;  %1525 = vmatpush1.bf16.msra.mxu1 %v2691_v39 }
 0x185   : > { %1444 = vmatprep.subr.bf16.mxu0 %v2696_v41  ;;  %1526 = vmatprep.subr.bf16.mxu1 %v2699_v42 }
 0x188   : > { %1445 = vmatpush1.bf16.msra.mxu0 %v2694_v43  ;;  %1527 = vmatpush1.bf16.msra.mxu1 %v2697_v44 }
 0x189   : > { %1446 = vmatprep.subr.bf16.mxu0 %v2702_v47  ;;  %1528 = vmatprep.subr.bf16.mxu1 %v2705_v48 }
 0x18c   : > { %1447 = vmatpush1.bf16.msra.mxu0 %v2700_v49  ;;  %1529 = vmatpush1.bf16.msra.mxu1 %v2703_v50 }
 0x18d   : > { %1448 = vmatprep.subr.bf16.mxu0 %v2708_v52  ;;  %1530 = vmatprep.subr.bf16.mxu1 %v2711_v54 }
 0x190   : > { %1449 = vmatpush1.bf16.msra.mxu0 %v2706_v55  ;;  %1531 = vmatpush1.bf16.msra.mxu1 %v2709_v56  ;;  %v2745_v56 = vld [vmem:[%s3263_s7 + $0x8] sm:$0xff]  }
 0x191   : > { %2334 = vmatprep.subr.bf16.mxu0 %v2712_v25  ;;  %2356 = vmatprep.subr.bf16.mxu1 %v2713_v58  ;;  %v2747_v25 = vld [vmem:[%s3263_s7 + $0x18] sm:$0xff]   ;;  %v2748_v58 = vld [vmem:[%s3263_s7 + $0x20] sm:$0xff]  }
 0x193   : > { %1451 = vmatmul.mubr.bf16.vlgmr.msra.gmra.mrb[0].mxu0 %v585_v61  ;;  %1533 = vmatmul.mubr.bf16.vlgmr.msra.gmra.mrb[8].mxu1 %v585_v61  ;;  %v2751_v61 = vld [vmem:[%s3263_s7 + $0x38] sm:$0xff]  }
 0x194   : > { %2335 = vmatpush3.bf16.msra.mxu0 %v2714_v59  ;;  %2357 = vmatpush3.bf16.msra.mxu1 %v2715_v60  ;;  %v2749_v59 = vld [vmem:[%s3263_s7 + $0x28] sm:$0xff]   ;;  %v2750_v60 = vld [vmem:[%s3263_s7 + $0x30] sm:$0xff]  }
 0x195   : > { %2336 = vmatprep.subr.bf16.mxu0 %v2716_v53  ;;  %2358 = vmatprep.subr.bf16.mxu1 %v2717_v62 }
 0x198   : > { %2337 = vmatpush3.bf16.msra.mxu0 %v2718_v63  ;;  %2359 = vmatpush3.bf16.msra.mxu1 %v2719_v1  ;;  %v2288_v63 = vld [vmem:[%s3262_s6] ss:$0 sm:$0xff] }
 0x199   : > { %2338 = vmatprep.subr.bf16.mxu0 %v2720_v2  ;;  %2360 = vmatprep.subr.bf16.mxu1 %v2721_v3 }
 0x19c   : > { %2339 = vmatpush3.bf16.msra.mxu0 %v2722_v4  ;;  %2361 = vmatpush3.bf16.msra.mxu1 %v2723_v5 }
 0x19d   : > { %2340 = vmatprep.subr.bf16.mxu0 %v2724_v6  ;;  %2362 = vmatprep.subr.bf16.mxu1 %v2725_v7 }
 0x1a0   : > { %2341 = vmatpush3.bf16.msra.mxu0 %v2726_v8  ;;  %2363 = vmatpush3.bf16.msra.mxu1 %v2727_v9 }
 0x1a1   : > { %2342 = vmatprep.subr.bf16.mxu0 %v2728_v10  ;;  %2364 = vmatprep.subr.bf16.mxu1 %v2729_v11 }
 0x1a4   : > { %2343 = vmatpush3.bf16.msra.mxu0 %v2730_v12  ;;  %2365 = vmatpush3.bf16.msra.mxu1 %v2731_v13  ;;  %v2321_v13 = vld [vmem:[%s3264_s8] ss:$0 sm:$0xff] }
 0x1a5   : > { %2344 = vmatprep.subr.bf16.mxu0 %v2732_v14  ;;  %2366 = vmatprep.subr.bf16.mxu1 %v2733_v15 }
 0x1a8   : > { %2345 = vmatpush3.bf16.msra.mxu0 %v2734_v16  ;;  %2367 = vmatpush3.bf16.msra.mxu1 %v2735_v17 }
 0x1a9   : > { %2346 = vmatprep.subr.bf16.mxu0 %v2736_v18  ;;  %2368 = vmatprep.subr.bf16.mxu1 %v2737_v19 }
 0x1ac   : > { %2347 = vmatpush3.bf16.msra.mxu0 %v2738_v20  ;;  %2369 = vmatpush3.bf16.msra.mxu1 %v2739_v21 }
 0x1ad   : > { %2348 = vmatprep.subr.bf16.mxu0 %v2740_v27  ;;  %2370 = vmatprep.subr.bf16.mxu1 %v2741_v28 }
 0x1b0   : > { %2349 = vmatpush3.bf16.msra.mxu0 %v2742_v29  ;;  %2371 = vmatpush3.bf16.msra.mxu1 %v2743_v30 }
 0x1b1   : > { %2387 = vmatprep.subr.bf16.mxu0 %v2920_v31 }
 0x266   : > { %v1452_v37 = vpop.f32.mrb[0].mxu0  ;;  %v1534_v38 = vpop.f32.mrb[8].mxu1 }
 0x267   : > { %v2407_v39 = vadd.f32 %v1452_v37, %v720_v33  ;;  %v2409_v41 = vadd.f32 %v1534_v38, %v728_v34  ;;  %v1454_v42 = vpop.f32.mrb[1].mxu0  ;;  %v1536_v43 = vpop.f32.mrb[9].mxu1 }
 0x268   : > { %v2408_v44 = vadd.f32 %v1454_v42, %v724_v35  ;;  %v2410_v46 = vadd.f32 %v1536_v43, %v732_v36  ;;  %v1456_v47 = vpop.f32.mrb[2].mxu0  ;;  %v1538_v48 = vpop.f32.mrb[10].mxu1 }
 0x269   : > { %v1541_v24 = vpack.c.bf16 %v2407_v39, %v2407_v39  ;;  %v1543_v49 = vpack.c.bf16 %v2409_v41, %v2409_v41  ;;  %v1457_v50 = vpop.f32.mrb[3].mxu0  ;;  %v1539_v40 = vpop.f32.mrb[11].mxu1 }
 0x26a   : > { %v1542_v51 = vpack.c.bf16 %v2408_v44, %v2408_v44  ;;  %v1544_v52 = vpack.c.bf16 %v2410_v46, %v2410_v46 }
 0x26b   : > { %v1545_v54 = vmax.bf16 %v2919_v0, %v1541_v24  ;;  %v1547_v55 = vmax.bf16 %v2919_v0, %v1543_v49 }
 0x26c   : > { %v1546_v26 = vmax.bf16 %v2919_v0, %v1542_v51  ;;  %v1548_v23 = vmax.bf16 %v2919_v0, %v1544_v52 }
 0x26e   : > { %1844 = vmatprep.mubr.bf16.mxu0 %v1546_v26  ;;  %1884 = vmatprep.mubr.bf16.mxu1 %v1548_v23 }
 0x26f   : > { %1845 = vmatmul.mubr.bf16.vlgmr.msra.gmra.mrb[4].mxu0 %v1545_v54  ;;  %1885 = vmatmul.mubr.bf16.vlgmr.msra.gmra.mrb[12].mxu1 %v1547_v55 }
 0x270   : > { %2388 = vmatpush3.bf16.msra.mxu0 %v2744_v45  ;;  %2403 = vmatprep.mubr.msk.bf16.mxu0 %vm2921_vm1, %v2920_v31 }
 0x271   : > { %2389 = vmatprep.subr.bf16.mxu0 %v2920_v31 }
 0x274   : > { %2390 = vmatpush3.bf16.msra.mxu0 %v2745_v56 }
 0x275   : > { %2391 = vmatprep.subr.bf16.mxu0 %v2920_v31 }
 0x278   : > { %2392 = vmatpush3.bf16.msra.mxu0 %v2746_v57 }
 0x279   : > { %2393 = vmatprep.subr.bf16.mxu0 %v2920_v31 }
 0x27c   : > { %2394 = vmatpush3.bf16.msra.mxu0 %v2747_v25 }
 0x27d   : > { %2395 = vmatprep.subr.bf16.mxu0 %v2920_v31 }
 0x280   : > { %2396 = vmatpush3.bf16.msra.mxu0 %v2748_v58 }
 0x281   : > { %2397 = vmatprep.subr.bf16.mxu0 %v2920_v31 }
 0x284   : > { %2398 = vmatpush3.bf16.msra.mxu0 %v2749_v59 }
 0x285   : > { %2399 = vmatprep.subr.bf16.mxu0 %v2920_v31 }
 0x288   : > { %2400 = vmatpush3.bf16.msra.mxu0 %v2750_v60 }
 0x289   : > { %2401 = vmatprep.subr.bf16.mxu0 %v2920_v31 }
 0x28c   : > { %2402 = vmatpush3.bf16.msra.mxu0 %v2751_v61 }
 0x342   : > { %v2350_v53 = vpop.f32.mrb[4].mxu0  ;;  %v2372_v62 = vpop.f32.mrb[12].mxu1 }
 0x343   : > { %v2351_v1 = vpop.f32.mrb[5].mxu0  ;;  %v2373_v2 = vpop.f32.mrb[13].mxu1 }
 0x344   : > { %v2352_v3 = vadd.f32 %v2351_v1, %v2350_v53  ;;  %v2374_v4 = vadd.f32 %v2373_v2, %v2372_v62  ;;  %v2353_v5 = vpop.f32.mrb[6].mxu0  ;;  %v2375_v6 = vpop.f32.mrb[14].mxu1 }
 0x345   : > { %v2354_v7 = vpop.f32.mrb[7].mxu0  ;;  %v2376_v8 = vpop.f32.mrb[15].mxu1 }
 0x346   : > { %v1847_v9 = vadd.f32 %v2352_v3, %v2288_v63 }
 0x348   : > { %v1887_v10 = vadd.f32 %v2374_v4, %v1847_v9 }
 0x34a   : > { %v1892_v11 = vpack.c.bf16 %v1887_v10, %v1887_v10 }
 0x34c   : > { %v1893_v12 = vmax.bf16 %v2919_v0, %v1892_v11 }
 0x34e   : > { %2404 = vmatmul.mubr.bf16.vlgmr.msra.gmra.mrb[8].mxu0 %v1893_v12 }
 0x421   : > { %v1999_v14 = vpop.f32.mrb[8].mxu0 }
 0x422   : > { %v2000_v15 = vadd.f32 %v2321_v13, %v1999_v14  ;;  %v2405_v16 = vpop.f32.mrb[9].mxu0 }
 0x423   : > { %v2002_v17 = vpop.f32.mrb[10].mxu0 }
 0x424   : > { %v2007_v18 = vand.u32 2147483647, %v2000_v15  ;;  %v2406_v19 = vpop.f32.mrb[11].mxu0  ;;  %v2005_v30 = vmax.f32 %v2000_v15, 0.0 }
 0x426   : > { %v2008_v20 = vsub.f32 0.0, %v2007_v18  ;;  %v2006_v36 = vadd.f32 1e-06, %v2005_v30 }
 0x428   : > { %v2009_v21 = vmul.f32 1.442695, %v2008_v20 }
 0x42a   : > { %2752 = vpow2.f32 %v2009_v21 }
 0x434   : > { %v2753_v27 = vpop.eup %2752 }
 0x435   : > { %v2011_v28 = vadd.f32 1.0, %v2753_v27  ;;  %v2014_v0 = vmul.f32 -0.5, %v2753_v27  ;;  %v2017_v31 = vand.u32 2147483647, %v2753_v27 }
 0x437   : > { %2754 = vlog2.f32 %v2011_v28  ;;  %v2015_v29 = vadd.f32 1.0, %v2014_v0  ;;  %vm2018_vm2 = vcmp.lt.f32.partialorder %v2017_v31, 0.0004427343 }
 0x439   : > { %v2016_v35 = vmul.f32 %v2753_v27, %v2015_v29 }
 0x441   : > { %v2755_v33 = vpop.eup %2754 }
 0x442   : > { %v2013_v34 = vmul.f32 0.6931472, %v2755_v33 }
 0x444   : > { %v2019_v37 = vsel %vm2018_vm2, %v2016_v35, %v2013_v34 }
 0x445   : > { %v2020_v38 = vadd.f32 %v2019_v37, %v2006_v36 }
 0x447   : > { %v2024_v22 = vsel %vm2023_vm3, %v2020_v38, %v2000_v15 }
 0x448   : > { %2025 = vst.msk [vmem:[%s367_s16] sm:$0xff] %vm493_vm0, %v2024_v22 }
 0x449   : > { %2853 = shalt.err (!%p2850_p9)
}
 0x44a   : > { %s2854_s17 = scalar_lea.hbm %s3213_s24, 128  ;;  %s2858_s27 = scalar_lea.hbm %s3265_s9, 256 }
 0x44b   : > { %p2855_p2 = scmp.ne.s32.totalorder %s3213_s24, %s2854_s17  ;;  %p2859_p5 = scmp.lt.u32.totalorder %s3213_s24, %s3265_s9 }
 0x44c   : > { %p2860_p10 = scmp.lt.u32.totalorder %s2858_s27, %s2854_s17  ;;  %p2862_p4 = scmp.lt.u32.totalorder %s2854_s17, %s3213_s24 }
 0x44d   : > { %p2856_p3 = pnand %p2855_p2, %p3289_p7 }
 0x44e   : > { %p2861_p12 = por %p2860_p10, %p2859_p5 }
 0x44f   : > { %p2857_p0 = pneg %p2856_p3 }
 0x450   : > { %p2863_p8 = por %p2862_p4, %p2861_p12 }
 0x452   : > { %p2864_p11 = pnand %p2863_p8, %p2857_p0 }
 0x454   : > { %2867 = shalt.err (!%p2864_p11)
}
 0x455   : > { %2431 = dma.vmem_to_hbm [thread:$0]  (%p3289_p7), %s3215_s30, 128, %s3213_s24, %s2027_s28  }
 0x456 PF: > { %s3290_s26 = sld [smem:[#allocation12_spill]]  ;;  %s3291_s14 = sld [smem:[#allocation16_spill]] }
 0x457   : > { %p2453_p13 = scmp.ge.s32.totalorder %s2910_s12, 2 }
 0x45c   : > { %s2052_s16 = sand.u32 1, %s3290_s26   ;;  %p3292_p1 = scmp.ne.s32.totalorder %s3291_s14, 0 }
 0x45d   : > { %s2053_s18 = scalar_lea.sflag [#allocation4], %s2052_s16 }
 0x45e   : > { %p2444_p6 = pnand %p2453_p13, %p3292_p1 }
 0x460   : > { %2893 = dma.done.wait (!%p2444_p6), %s2053_s18, 128  }
 0x461   : > { %2895 = vsyncadd (!%p2444_p6), %s2053_s18, 4294967168  ;;  %s3293_s12 = sld [smem:[#allocation14_spill]]  ;;  %s3294_s21 = sld [smem:[#allocation13_spill]] }
 0x462   : > { %s3295_s11 = sld [smem:[#allocation15_spill]]  ;;  %s3296_s30 = smov %s2902_s10 }
 0x467   : > { %p21_p9 = scmp.ge.s32.totalorder %s3293_s12, 4   ;;  %s3297_s10 = smov %s3294_s21 }
 0x469   :  { %23 = sbr.rel (!%p21_p9) target bundleno = 5 (0x5), region = 104 }
 0x470   :  { %2058 = vsyncpa [#allocation3], 1 }
 0x471   :  { %2060 = vsyncpa [#allocation3 + $0x1], 1 }
 0x472   :  { %2061 = vsyncpa [#allocation6], 1 }
 0x473   :  { %2062 = vsyncpa [#allocation4], 1 }
 0x474   :  { %2064 = vsyncpa [#allocation4 + $0x1], 1 }

</bundles_post_ra>
